<compile_context>
chip_gen: v7x
topology: tpu7x:2x2x1
jax: 0.10.0
libtpu: 0.0.40
codegen_flags: <defaults>
</compile_context>

<pallas_src>
import functools

import numpy as np
import jax
import jax.numpy as jnp
from jax.experimental import pallas as pl
from jax.experimental.pallas import tpu as pltpu

_NEG = -1e30      # finite stand-in for -inf (keeps the log-add-exp NaN/overflow free)
_LANE = 128       # alpha / emit lane width (max supported target length)


def _ctc_noblank_kernel(tmax_smem, last_smem,                 # scalar prefetch (SMEM)
                        x_ref, tgt_ref, llv_ref, tlv_ref,     # VMEM inputs
                        out_ref,                              # VMEM output, resident over time tiles
                        emit_ref, alpha_ref,                  # VMEM scratch
                        *, after_softmax, block_t):
    del last_smem                                             # only consumed by the index_maps
    i = pl.program_id(0)
    j = pl.program_id(1)
    nt = pl.num_programs(1)
    bp, lane = alpha_ref.shape
    t0 = j * block_t

    s_iota = jax.lax.broadcasted_iota(jnp.int32, (1, lane), 1)
    t_max = tmax_smem[i]                                      # longest sequence in this batch tile

    @pl.when(j == 0)
    def _seed():
        # All-(-inf) start; the t==0 boundary injection inside the loop seeds alpha[0]=em[0,0].
        alpha_ref[...] = jnp.full((bp, lane), _NEG, jnp.float32)

    @pl.when(t0 < t_max)
    def _compute():
        c_dim = x_ref.shape[-1]
        # hoisted out of the row loop: JAX does not CSE broadcast_in_dim
        c_iota = jax.lax.broadcasted_iota(jnp.int32, (c_dim, lane), 0)

        # ---- gather emission log-probs: emit[r*block_t + t, s] = logp[r, t0+t, targets[r, s]]
        for r in range(bp):                                   # static unroll over packed rows
            x_r = x_ref[r]                                    # (block_t, C), streamed bf16
            onehot = (c_iota == tgt_ref[pl.ds(r, 1), :]).astype(x_r.dtype)   # (C, 128)
            gath = jnp.dot(x_r, onehot,                       # single-pass MXU gather (exact copy)
                           preferred_element_type=jnp.float32)               # (block_t, 128)
            if after_softmax:
                e_r = jnp.maximum(jnp.log(jnp.maximum(gath, 1e-30)), _NEG)
            else:
                xf = x_r.astype(jnp.float32)
                m = jnp.max(xf, axis=-1, keepdims=True)
                lse = m + jnp.log(jnp.sum(jnp.exp(xf - m), axis=-1, keepdims=True))
                e_r = gath - lse
            emit_ref[pl.ds(r * block_t, block_t), :] = e_r    # batch-major rows, contiguous store

        llv = llv_ref[...]                                    # (bp, 1) int32 per-row lengths
        hi = jnp.minimum(t_max - t0, block_t)                 # dynamic trip count (skip time pad)

        def load_e(t):
            # one (bp, 128) emission slab: row r of the vreg <- emit[r*block_t + t]
            return emit_ref[pl.ds(t, bp, stride=block_t), :]

        def body(t, carry):
            alpha, e_t = carry
            g = t0 + t                                        # global time step
            # software-pipelined fetch of the NEXT step's emissions (independent of alpha chain)
            e_next = load_e(jnp.minimum(t + 1, block_t - 1))
            shifted = pltpu.roll(alpha, shift=1, axis=1)      # alpha[s-1] via XLU
            boundary = jnp.where(g == 0, 0.0, _NEG)           # virtual alpha[-1]=0 only at t==0
            shifted = jnp.where(s_iota == 0, boundary, shifted)
            mx = jnp.maximum(alpha, shifted)
            # log(1+x) with x=exp(-|d|) in [0,1]: identical to log1p at f32 absolute accuracy here
            cand = e_t + mx + jnp.log(1.0 + jnp.exp(-jnp.abs(alpha - shifted)))
            alpha = jnp.where(g < llv, cand, alpha)           # freeze rows past their length
            return alpha, e_next

        alpha_fin, _ = jax.lax.fori_loop(0, hi, body, (alpha_ref[...], load_e(0)))
        alpha_ref[...] = alpha_fin

    @pl.when(j == nt - 1)
    def _readout():
        alpha = alpha_ref[...]
        smask = s_iota == (tlv_ref[...] - 1)                  # (bp, 128)
        loglik = jnp.max(jnp.where(smask, alpha, _NEG), axis=-1, keepdims=True)   # (bp, 1)
        out_ref[...] = jnp.broadcast_to(-loglik, alpha.shape)                     # lane-dense store


def _vmem_capacity_bytes():
    try:
        cap = int(getattr(pltpu.get_tpu_info(), "vmem_capacity_bytes", 0))
        if cap > 0:
            return cap
    except Exception:
        pass
    return 64 << 20        # conservative fallback == v7x physical VMEM


def _pick_tiling(B, T, C, itemsize, vmem_cap):
    # dtype-aware sublane-tiling floor for the (block_t, C) trailing dims of the logits block
    floor_t = 8 if itemsize >= 4 else (16 if itemsize == 2 else 32)
    t_cap = 256 if vmem_cap >= (96 << 20) else 128            # bigger tiles on v5e/v6e
    want_t = 1 << max(0, int(max(T, 1) - 1).bit_length())
    block_t = min(t_cap, max(floor_t, want_t))
    bp = 8
    for cand in (32, 16):                                     # interleave 2-4 recursions / step,
        if B >= 2 * cand:                                     # but keep >=2 batch tiles (v7x 2 TCs)
            bp = cand
            break
    budget = int(vmem_cap * 0.55)

    def tile_bytes(bp_, bt_):
        return (2 * bp_ * bt_ * C * itemsize                  # double-buffered logits tile
                + bp_ * bt_ * _LANE * 4                       # emission scratch
                + 8 * bp_ * _LANE * 4                         # alpha / targets / out / lengths
                + (1 << 20))

    while tile_bytes(bp, block_t) > budget and block_t > floor_t:
        block_t //= 2
    while tile_bytes(bp, block_t) > budget and bp > 8:
        bp //= 2
    return bp, block_t, tile_bytes(bp, block_t)


def ctc_without_blank_loss(logits, targets, logits_lengths, targets_lengths,
                           reduce=True, after_softmax=False, space_idx=-1):
    del space_idx  # TODO(synk): space_idx >= 0 path not implemented (see header).
    B, T, C = logits.shape
    S = targets.shape[1]
    assert S <= _LANE, "this kernel supports target length <= 128"

    # stream logits as bf16: halves HBM traffic / VMEM; renormalization + recursion stay f32
    x = logits.astype(jnp.bfloat16)
    itemsize = 2

    vmem_cap = _vmem_capacity_bytes()
    bp, block_t, working = _pick_tiling(B, T, C, itemsize, vmem_cap)

    T_pad = -(-T // block_t) * block_t
    B_pad = -(-B // bp) * bp
    nb, nt = B_pad // bp, T_pad // block_t

    if (T_pad != T) or (B_pad != B):
        x = jnp.pad(x, ((0, B_pad - B), (0, T_pad - T), (0, 0)))
    tgt = jnp.pad(targets.astype(jnp.int32),
                  ((0, B_pad - B), (0, _LANE - S)),
                  constant_values=C)                          # C == out-of-vocab sentinel
    ll = jnp.pad(jnp.clip(logits_lengths.astype(jnp.int32), 1, T),
                 (0, B_pad - B), constant_values=1)
    tl = jnp.pad(jnp.clip(targets_lengths.astype(jnp.int32), 1, S),
                 (0, B_pad - B), constant_values=1)
    ll_vec = ll.reshape(B_pad, 1)
    tl_vec = tl.reshape(B_pad, 1)

    # per-batch-tile longest sequence + last valid time-tile index (scalar prefetch -> SMEM)
    tile_tmax = jnp.max(ll.reshape(nb, bp), axis=1).astype(jnp.int32)        # (nb,)
    tile_last = ((tile_tmax - 1) // block_t).astype(jnp.int32)               # (nb,)

    vmem_limit = int(min(int(vmem_cap * 0.85), max(32 << 20, working + (4 << 20))))

    kernel = functools.partial(_ctc_noblank_kernel,
                               after_softmax=after_softmax, block_t=block_t)
    out = pl.pallas_call(
        kernel,
        out_shape=jax.ShapeDtypeStruct((B_pad, _LANE), jnp.float32),
        grid_spec=pltpu.PrefetchScalarGridSpec(
            num_scalar_prefetch=2,                            # tile_tmax, tile_last -> SMEM
            grid=(nb, nt),
            in_specs=[
                # clamp the time block index so fully padded time tiles skip their DMA
                pl.BlockSpec((bp, block_t, C),
                             lambda i, j, tmax, last: (i, jnp.minimum(j, last[i]), 0)),
                pl.BlockSpec((bp, _LANE), lambda i, j, tmax, last: (i, 0)),   # targets
                pl.BlockSpec((bp, 1), lambda i, j, tmax, last: (i, 0)),       # logits lengths
                pl.BlockSpec((bp, 1), lambda i, j, tmax, last: (i, 0)),       # target lengths
            ],
            out_specs=pl.BlockSpec((bp, _LANE), lambda i, j, tmax, last: (i, 0)),
            scratch_shapes=[
                pltpu.VMEM((bp * block_t, _LANE), jnp.float32),   # emission, batch-major rows
                pltpu.VMEM((bp, _LANE), jnp.float32),             # alpha, carried across time tiles
            ],
        ),
        compiler_params=pltpu.CompilerParams(
            dimension_semantics=("parallel", "arbitrary"),
            vmem_limit_bytes=vmem_limit),
    )(tile_tmax, tile_last, x, tgt, ll_vec, tl_vec)

    losses = out[:B, 0]
    return losses.sum() if reduce else losses


def _reference_loss(logits, targets, logits_lengths, targets_lengths,
                    reduce=True, after_softmax=False):
    logits = np.asarray(logits, np.float64)
    targets = np.asarray(targets)
    if after_softmax:
        logp = np.log(logits)
    else:
        m = logits.max(axis=-1, keepdims=True)
        logp = (logits - m) - np.log(np.exp(logits - m).sum(axis=-1, keepdims=True))
    B = logits.shape[0]
    S = targets.shape[1]
    losses = []
    for b in range(B):
        Tb = int(logits_lengths[b])
        Sb = int(targets_lengths[b])
        em = logp[b][:, targets[b]]                   # (T, S)
        alpha = np.full(S, -np.inf)
        alpha[0] = em[0, 0]
        for t in range(1, Tb):
            prev_shift = np.concatenate([[-np.inf], alpha[:-1]])
            alpha = em[t] + np.logaddexp(alpha, prev_shift)
        losses.append(-alpha[Sb - 1])
    losses = np.array(losses, np.float32)
    return losses.sum() if reduce else losses


if __name__ == "__main__":
    B, T, C, S = 2, 16, 32, 8
    key = jax.random.PRNGKey(0)
    k1, k2 = jax.random.split(key)
    logits = jax.random.normal(k1, (B, T, C), dtype=jnp.float32)
    targets = jax.random.randint(k2, (B, S), 0, C, dtype=jnp.int32)
    logits_lengths = jnp.array([T, T - 4], dtype=jnp.int32)
    targets_lengths = jnp.array([S, S - 3], dtype=jnp.int32)

    loss = ctc_without_blank_loss(logits, targets, logits_lengths, targets_lengths,
                                  reduce=True, after_softmax=False, space_idx=-1)
    loss = jax.block_until_ready(loss)

    ref = _reference_loss(logits, targets, logits_lengths, targets_lengths, reduce=True)
    np.testing.assert_allclose(np.asarray(loss), ref, rtol=2e-3, atol=2e-3)
    print("KERNEL_OK")
</pallas_src>

<mosaic_0001>
module attributes {stable_mosaic.version = 11 : i64} {
  func.func @_ctc_noblank_kernel(%arg0: i32, %arg1: i32, %arg2: memref<1xi32, #tpu.memory_space<smem>>, %arg3: memref<1xi32, #tpu.memory_space<smem>>, %arg4: memref<8x16x32xbf16, #tpu.memory_space<vmem>>, %arg5: memref<8x128xi32, #tpu.memory_space<vmem>>, %arg6: memref<8x1xi32, #tpu.memory_space<vmem>>, %arg7: memref<8x1xi32, #tpu.memory_space<vmem>>, %arg8: memref<8x128xf32, #tpu.memory_space<vmem>>, %arg9: memref<128x128xf32, #tpu.memory_space<vmem>>, %arg10: memref<8x128xf32, #tpu.memory_space<vmem>>) attributes {dimension_semantics = [#tpu.dimension_semantics<parallel>, #tpu.dimension_semantics<arbitrary>], iteration_bounds = array<i64: 1, 1>, scalar_prefetch = 2 : i64, scratch_operands = 2 : i64, tpu.core_type = #tpu.core_type<tc>, window_params = [{transform_indices = @transform_0, window_bounds = array<i64: 8, 16, 32>}, {transform_indices = @transform_1, window_bounds = array<i64: 8, 128>}, {transform_indices = @transform_2, window_bounds = array<i64: 8, 1>}, {transform_indices = @transform_3, window_bounds = array<i64: 8, 1>}, {transform_indices = @transform_4, window_bounds = array<i64: 8, 128>}]} {
    %c16_i32 = arith.constant 16 : i32
    %0 = arith.muli %arg1, %c16_i32 : i32
    %1 = tpu.iota {dimensions = array<i32: 1>} : vector<1x128xi32>
    %2 = arith.index_cast %arg0 : i32 to index
    %3 = memref.load %arg2[%2] : memref<1xi32, #tpu.memory_space<smem>>
    %c0_i32 = arith.constant 0 : i32
    %4 = arith.cmpi eq, %arg1, %c0_i32 : i32
    %5 = arith.extui %4 : i1 to i32
    %c0_i32_0 = arith.constant 0 : i32
    %6 = arith.cmpi ne, %5, %c0_i32_0 : i32
    scf.if %6 {
      %cst = arith.constant -1.000000e+30 : f32
      %13 = vector.broadcast %cst : f32 to vector<8x128xf32>
      %c0 = arith.constant 0 : index
      %c0_4 = arith.constant 0 : index
      %14 = vector.load %arg10[%c0, %c0_4] : memref<8x128xf32, #tpu.memory_space<vmem>>, vector<8x128xf32>
      tpu.vector_store %arg10[%c0, %c0_4], %13 {strides = array<i32>} : memref<8x128xf32, #tpu.memory_space<vmem>>, vector<8x128xf32>,
    } else {
    }
    %7 = arith.cmpi slt, %0, %3 : i32
    %8 = arith.extui %7 : i1 to i32
    %c0_i32_1 = arith.constant 0 : i32
    %9 = arith.cmpi ne, %8, %c0_i32_1 : i32
    scf.if %9 {
      %13 = tpu.iota {dimensions = array<i32: 0>} : vector<32x128xi32>
      %c0 = arith.constant 0 : index
      %c0_4 = arith.constant 0 : index
      %c0_5 = arith.constant 0 : index
      %14 = vector.load %arg4[%c0, %c0_4, %c0_5] : memref<8x16x32xbf16, #tpu.memory_space<vmem>>, vector<1x16x32xbf16>
      %15 = vector.shape_cast %14 : vector<1x16x32xbf16> to vector<16x32xbf16>
      %c0_6 = arith.constant 0 : index
      %c0_7 = arith.constant 0 : index
      %16 = vector.load %arg5[%c0_6, %c0_7] : memref<8x128xi32, #tpu.memory_space<vmem>>, vector<1x128xi32>
      %17 = vector.broadcast %16 : vector<1x128xi32> to vector<32x128xi32>
      %18 = arith.cmpi eq, %13, %17 : vector<32x128xi32>
      %19 = arith.extui %18 : vector<32x128xi1> to vector<32x128xi32>
      %20 = arith.sitofp %19 : vector<32x128xi32> to vector<32x128xf32>
      %21 = arith.truncf %20 : vector<32x128xf32> to vector<32x128xbf16>
      %cst = arith.constant dense<0.000000e+00> : vector<16x128xf32>
      %22 = tpu.matmul %15, %21, %cst {dimension_numbers = #tpu.dot_dimension_numbers<[1], [0], [0], [1], [0, 0, 1, 1], [], []>} : vector<16x32xbf16>, vector<32x128xbf16>, vector<16x128xf32> -> vector<16x128xf32>
      %23 = arith.extf %15 : vector<16x32xbf16> to vector<16x32xf32>
      %cst_8 = arith.constant dense<0xFF800000> : vector<16xf32>
      %24 = vector.multi_reduction <maximumf>, %23, %cst_8 [1] : vector<16x32xf32> to vector<16xf32>
      %25 = vector.shape_cast %24 : vector<16xf32> to vector<16x1xf32>
      %26 = vector.broadcast %25 : vector<16x1xf32> to vector<16x32xf32>
      %27 = arith.subf %23, %26 : vector<16x32xf32>
      %28 = math.exp %27 : vector<16x32xf32>
      %cst_9 = arith.constant dense<0.000000e+00> : vector<16xf32>
      %29 = vector.multi_reduction <add>, %28, %cst_9 [1] : vector<16x32xf32> to vector<16xf32>
      %30 = vector.shape_cast %29 : vector<16xf32> to vector<16x1xf32>
      %31 = math.log %30 : vector<16x1xf32>
      %32 = arith.addf %25, %31 : vector<16x1xf32>
      %33 = vector.broadcast %32 : vector<16x1xf32> to vector<16x128xf32>
      %34 = arith.subf %22, %33 : vector<16x128xf32>
      %c0_10 = arith.constant 0 : index
      %c0_11 = arith.constant 0 : index
      %35 = vector.load %arg9[%c0_10, %c0_11] : memref<128x128xf32, #tpu.memory_space<vmem>>, vector<16x128xf32>
      tpu.vector_store %arg9[%c0_10, %c0_11], %34 {strides = array<i32>} : memref<128x128xf32, #tpu.memory_space<vmem>>, vector<16x128xf32>,
      %c1 = arith.constant 1 : index
      %c0_12 = arith.constant 0 : index
      %c0_13 = arith.constant 0 : index
      %36 = vector.load %arg4[%c1, %c0_12, %c0_13] : memref<8x16x32xbf16, #tpu.memory_space<vmem>>, vector<1x16x32xbf16>
      %37 = vector.shape_cast %36 : vector<1x16x32xbf16> to vector<16x32xbf16>
      %c1_14 = arith.constant 1 : index
      %c0_15 = arith.constant 0 : index
      %38 = vector.load %arg5[%c1_14, %c0_15] : memref<8x128xi32, #tpu.memory_space<vmem>>, vector<1x128xi32>
      %39 = vector.broadcast %38 : vector<1x128xi32> to vector<32x128xi32>
      %40 = arith.cmpi eq, %13, %39 : vector<32x128xi32>
      %41 = arith.extui %40 : vector<32x128xi1> to vector<32x128xi32>
      %42 = arith.sitofp %41 : vector<32x128xi32> to vector<32x128xf32>
      %43 = arith.truncf %42 : vector<32x128xf32> to vector<32x128xbf16>
      %cst_16 = arith.constant dense<0.000000e+00> : vector<16x128xf32>
      %44 = tpu.matmul %37, %43, %cst_16 {dimension_numbers = #tpu.dot_dimension_numbers<[1], [0], [0], [1], [0, 0, 1, 1], [], []>} : vector<16x32xbf16>, vector<32x128xbf16>, vector<16x128xf32> -> vector<16x128xf32>
      %45 = arith.extf %37 : vector<16x32xbf16> to vector<16x32xf32>
      %cst_17 = arith.constant dense<0xFF800000> : vector<16xf32>
      %46 = vector.multi_reduction <maximumf>, %45, %cst_17 [1] : vector<16x32xf32> to vector<16xf32>
      %47 = vector.shape_cast %46 : vector<16xf32> to vector<16x1xf32>
      %48 = vector.broadcast %47 : vector<16x1xf32> to vector<16x32xf32>
      %49 = arith.subf %45, %48 : vector<16x32xf32>
      %50 = math.exp %49 : vector<16x32xf32>
      %cst_18 = arith.constant dense<0.000000e+00> : vector<16xf32>
      %51 = vector.multi_reduction <add>, %50, %cst_18 [1] : vector<16x32xf32> to vector<16xf32>
      %52 = vector.shape_cast %51 : vector<16xf32> to vector<16x1xf32>
      %53 = math.log %52 : vector<16x1xf32>
      %54 = arith.addf %47, %53 : vector<16x1xf32>
      %55 = vector.broadcast %54 : vector<16x1xf32> to vector<16x128xf32>
      %56 = arith.subf %44, %55 : vector<16x128xf32>
      %c16 = arith.constant 16 : index
      %c0_19 = arith.constant 0 : index
      %57 = vector.load %arg9[%c16, %c0_19] : memref<128x128xf32, #tpu.memory_space<vmem>>, vector<16x128xf32>
      tpu.vector_store %arg9[%c16, %c0_19], %56 {strides = array<i32>} : memref<128x128xf32, #tpu.memory_space<vmem>>, vector<16x128xf32>,
      %c2 = arith.constant 2 : index
      %c0_20 = arith.constant 0 : index
      %c0_21 = arith.constant 0 : index
      %58 = vector.load %arg4[%c2, %c0_20, %c0_21] : memref<8x16x32xbf16, #tpu.memory_space<vmem>>, vector<1x16x32xbf16>
      %59 = vector.shape_cast %58 : vector<1x16x32xbf16> to vector<16x32xbf16>
      %c2_22 = arith.constant 2 : index
      %c0_23 = arith.constant 0 : index
      %60 = vector.load %arg5[%c2_22, %c0_23] : memref<8x128xi32, #tpu.memory_space<vmem>>, vector<1x128xi32>
      %61 = vector.broadcast %60 : vector<1x128xi32> to vector<32x128xi32>
      %62 = arith.cmpi eq, %13, %61 : vector<32x128xi32>
      %63 = arith.extui %62 : vector<32x128xi1> to vector<32x128xi32>
      %64 = arith.sitofp %63 : vector<32x128xi32> to vector<32x128xf32>
      %65 = arith.truncf %64 : vector<32x128xf32> to vector<32x128xbf16>
      %cst_24 = arith.constant dense<0.000000e+00> : vector<16x128xf32>
      %66 = tpu.matmul %59, %65, %cst_24 {dimension_numbers = #tpu.dot_dimension_numbers<[1], [0], [0], [1], [0, 0, 1, 1], [], []>} : vector<16x32xbf16>, vector<32x128xbf16>, vector<16x128xf32> -> vector<16x128xf32>
      %67 = arith.extf %59 : vector<16x32xbf16> to vector<16x32xf32>
      %cst_25 = arith.constant dense<0xFF800000> : vector<16xf32>
      %68 = vector.multi_reduction <maximumf>, %67, %cst_25 [1] : vector<16x32xf32> to vector<16xf32>
      %69 = vector.shape_cast %68 : vector<16xf32> to vector<16x1xf32>
      %70 = vector.broadcast %69 : vector<16x1xf32> to vector<16x32xf32>
      %71 = arith.subf %67, %70 : vector<16x32xf32>
      %72 = math.exp %71 : vector<16x32xf32>
      %cst_26 = arith.constant dense<0.000000e+00> : vector<16xf32>
      %73 = vector.multi_reduction <add>, %72, %cst_26 [1] : vector<16x32xf32> to vector<16xf32>
      %74 = vector.shape_cast %73 : vector<16xf32> to vector<16x1xf32>
      %75 = math.log %74 : vector<16x1xf32>
      %76 = arith.addf %69, %75 : vector<16x1xf32>
      %77 = vector.broadcast %76 : vector<16x1xf32> to vector<16x128xf32>
      %78 = arith.subf %66, %77 : vector<16x128xf32>
      %c32 = arith.constant 32 : index
      %c0_27 = arith.constant 0 : index
      %79 = vector.load %arg9[%c32, %c0_27] : memref<128x128xf32, #tpu.memory_space<vmem>>, vector<16x128xf32>
      tpu.vector_store %arg9[%c32, %c0_27], %78 {strides = array<i32>} : memref<128x128xf32, #tpu.memory_space<vmem>>, vector<16x128xf32>,
      %c3 = arith.constant 3 : index
      %c0_28 = arith.constant 0 : index
      %c0_29 = arith.constant 0 : index
      %80 = vector.load %arg4[%c3, %c0_28, %c0_29] : memref<8x16x32xbf16, #tpu.memory_space<vmem>>, vector<1x16x32xbf16>
      %81 = vector.shape_cast %80 : vector<1x16x32xbf16> to vector<16x32xbf16>
      %c3_30 = arith.constant 3 : index
      %c0_31 = arith.constant 0 : index
      %82 = vector.load %arg5[%c3_30, %c0_31] : memref<8x128xi32, #tpu.memory_space<vmem>>, vector<1x128xi32>
      %83 = vector.broadcast %82 : vector<1x128xi32> to vector<32x128xi32>
      %84 = arith.cmpi eq, %13, %83 : vector<32x128xi32>
      %85 = arith.extui %84 : vector<32x128xi1> to vector<32x128xi32>
      %86 = arith.sitofp %85 : vector<32x128xi32> to vector<32x128xf32>
      %87 = arith.truncf %86 : vector<32x128xf32> to vector<32x128xbf16>
      %cst_32 = arith.constant dense<0.000000e+00> : vector<16x128xf32>
      %88 = tpu.matmul %81, %87, %cst_32 {dimension_numbers = #tpu.dot_dimension_numbers<[1], [0], [0], [1], [0, 0, 1, 1], [], []>} : vector<16x32xbf16>, vector<32x128xbf16>, vector<16x128xf32> -> vector<16x128xf32>
      %89 = arith.extf %81 : vector<16x32xbf16> to vector<16x32xf32>
      %cst_33 = arith.constant dense<0xFF800000> : vector<16xf32>
      %90 = vector.multi_reduction <maximumf>, %89, %cst_33 [1] : vector<16x32xf32> to vector<16xf32>
      %91 = vector.shape_cast %90 : vector<16xf32> to vector<16x1xf32>
      %92 = vector.broadcast %91 : vector<16x1xf32> to vector<16x32xf32>
      %93 = arith.subf %89, %92 : vector<16x32xf32>
      %94 = math.exp %93 : vector<16x32xf32>
      %cst_34 = arith.constant dense<0.000000e+00> : vector<16xf32>
      %95 = vector.multi_reduction <add>, %94, %cst_34 [1] : vector<16x32xf32> to vector<16xf32>
      %96 = vector.shape_cast %95 : vector<16xf32> to vector<16x1xf32>
      %97 = math.log %96 : vector<16x1xf32>
      %98 = arith.addf %91, %97 : vector<16x1xf32>
      %99 = vector.broadcast %98 : vector<16x1xf32> to vector<16x128xf32>
      %100 = arith.subf %88, %99 : vector<16x128xf32>
      %c48 = arith.constant 48 : index
      %c0_35 = arith.constant 0 : index
      %101 = vector.load %arg9[%c48, %c0_35] : memref<128x128xf32, #tpu.memory_space<vmem>>, vector<16x128xf32>
      tpu.vector_store %arg9[%c48, %c0_35], %100 {strides = array<i32>} : memref<128x128xf32, #tpu.memory_space<vmem>>, vector<16x128xf32>,
      %c4 = arith.constant 4 : index
      %c0_36 = arith.constant 0 : index
      %c0_37 = arith.constant 0 : index
      %102 = vector.load %arg4[%c4, %c0_36, %c0_37] : memref<8x16x32xbf16, #tpu.memory_space<vmem>>, vector<1x16x32xbf16>
      %103 = vector.shape_cast %102 : vector<1x16x32xbf16> to vector<16x32xbf16>
      %c4_38 = arith.constant 4 : index
      %c0_39 = arith.constant 0 : index
      %104 = vector.load %arg5[%c4_38, %c0_39] : memref<8x128xi32, #tpu.memory_space<vmem>>, vector<1x128xi32>
      %105 = vector.broadcast %104 : vector<1x128xi32> to vector<32x128xi32>
      %106 = arith.cmpi eq, %13, %105 : vector<32x128xi32>
      %107 = arith.extui %106 : vector<32x128xi1> to vector<32x128xi32>
      %108 = arith.sitofp %107 : vector<32x128xi32> to vector<32x128xf32>
      %109 = arith.truncf %108 : vector<32x128xf32> to vector<32x128xbf16>
      %cst_40 = arith.constant dense<0.000000e+00> : vector<16x128xf32>
      %110 = tpu.matmul %103, %109, %cst_40 {dimension_numbers = #tpu.dot_dimension_numbers<[1], [0], [0], [1], [0, 0, 1, 1], [], []>} : vector<16x32xbf16>, vector<32x128xbf16>, vector<16x128xf32> -> vector<16x128xf32>
      %111 = arith.extf %103 : vector<16x32xbf16> to vector<16x32xf32>
      %cst_41 = arith.constant dense<0xFF800000> : vector<16xf32>
      %112 = vector.multi_reduction <maximumf>, %111, %cst_41 [1] : vector<16x32xf32> to vector<16xf32>
      %113 = vector.shape_cast %112 : vector<16xf32> to vector<16x1xf32>
      %114 = vector.broadcast %113 : vector<16x1xf32> to vector<16x32xf32>
      %115 = arith.subf %111, %114 : vector<16x32xf32>
      %116 = math.exp %115 : vector<16x32xf32>
      %cst_42 = arith.constant dense<0.000000e+00> : vector<16xf32>
      %117 = vector.multi_reduction <add>, %116, %cst_42 [1] : vector<16x32xf32> to vector<16xf32>
      %118 = vector.shape_cast %117 : vector<16xf32> to vector<16x1xf32>
      %119 = math.log %118 : vector<16x1xf32>
      %120 = arith.addf %113, %119 : vector<16x1xf32>
      %121 = vector.broadcast %120 : vector<16x1xf32> to vector<16x128xf32>
      %122 = arith.subf %110, %121 : vector<16x128xf32>
      %c64 = arith.constant 64 : index
      %c0_43 = arith.constant 0 : index
      %123 = vector.load %arg9[%c64, %c0_43] : memref<128x128xf32, #tpu.memory_space<vmem>>, vector<16x128xf32>
      tpu.vector_store %arg9[%c64, %c0_43], %122 {strides = array<i32>} : memref<128x128xf32, #tpu.memory_space<vmem>>, vector<16x128xf32>,
      %c5 = arith.constant 5 : index
      %c0_44 = arith.constant 0 : index
      %c0_45 = arith.constant 0 : index
      %124 = vector.load %arg4[%c5, %c0_44, %c0_45] : memref<8x16x32xbf16, #tpu.memory_space<vmem>>, vector<1x16x32xbf16>
      %125 = vector.shape_cast %124 : vector<1x16x32xbf16> to vector<16x32xbf16>
      %c5_46 = arith.constant 5 : index
      %c0_47 = arith.constant 0 : index
      %126 = vector.load %arg5[%c5_46, %c0_47] : memref<8x128xi32, #tpu.memory_space<vmem>>, vector<1x128xi32>
      %127 = vector.broadcast %126 : vector<1x128xi32> to vector<32x128xi32>
      %128 = arith.cmpi eq, %13, %127 : vector<32x128xi32>
      %129 = arith.extui %128 : vector<32x128xi1> to vector<32x128xi32>
      %130 = arith.sitofp %129 : vector<32x128xi32> to vector<32x128xf32>
      %131 = arith.truncf %130 : vector<32x128xf32> to vector<32x128xbf16>
      %cst_48 = arith.constant dense<0.000000e+00> : vector<16x128xf32>
      %132 = tpu.matmul %125, %131, %cst_48 {dimension_numbers = #tpu.dot_dimension_numbers<[1], [0], [0], [1], [0, 0, 1, 1], [], []>} : vector<16x32xbf16>, vector<32x128xbf16>, vector<16x128xf32> -> vector<16x128xf32>
      %133 = arith.extf %125 : vector<16x32xbf16> to vector<16x32xf32>
      %cst_49 = arith.constant dense<0xFF800000> : vector<16xf32>
      %134 = vector.multi_reduction <maximumf>, %133, %cst_49 [1] : vector<16x32xf32> to vector<16xf32>
      %135 = vector.shape_cast %134 : vector<16xf32> to vector<16x1xf32>
      %136 = vector.broadcast %135 : vector<16x1xf32> to vector<16x32xf32>
      %137 = arith.subf %133, %136 : vector<16x32xf32>
      %138 = math.exp %137 : vector<16x32xf32>
      %cst_50 = arith.constant dense<0.000000e+00> : vector<16xf32>
      %139 = vector.multi_reduction <add>, %138, %cst_50 [1] : vector<16x32xf32> to vector<16xf32>
      %140 = vector.shape_cast %139 : vector<16xf32> to vector<16x1xf32>
      %141 = math.log %140 : vector<16x1xf32>
      %142 = arith.addf %135, %141 : vector<16x1xf32>
      %143 = vector.broadcast %142 : vector<16x1xf32> to vector<16x128xf32>
      %144 = arith.subf %132, %143 : vector<16x128xf32>
      %c80 = arith.constant 80 : index
      %c0_51 = arith.constant 0 : index
      %145 = vector.load %arg9[%c80, %c0_51] : memref<128x128xf32, #tpu.memory_space<vmem>>, vector<16x128xf32>
      tpu.vector_store %arg9[%c80, %c0_51], %144 {strides = array<i32>} : memref<128x128xf32, #tpu.memory_space<vmem>>, vector<16x128xf32>,
      %c6 = arith.constant 6 : index
      %c0_52 = arith.constant 0 : index
      %c0_53 = arith.constant 0 : index
      %146 = vector.load %arg4[%c6, %c0_52, %c0_53] : memref<8x16x32xbf16, #tpu.memory_space<vmem>>, vector<1x16x32xbf16>
      %147 = vector.shape_cast %146 : vector<1x16x32xbf16> to vector<16x32xbf16>
      %c6_54 = arith.constant 6 : index
      %c0_55 = arith.constant 0 : index
      %148 = vector.load %arg5[%c6_54, %c0_55] : memref<8x128xi32, #tpu.memory_space<vmem>>, vector<1x128xi32>
      %149 = vector.broadcast %148 : vector<1x128xi32> to vector<32x128xi32>
      %150 = arith.cmpi eq, %13, %149 : vector<32x128xi32>
      %151 = arith.extui %150 : vector<32x128xi1> to vector<32x128xi32>
      %152 = arith.sitofp %151 : vector<32x128xi32> to vector<32x128xf32>
      %153 = arith.truncf %152 : vector<32x128xf32> to vector<32x128xbf16>
      %cst_56 = arith.constant dense<0.000000e+00> : vector<16x128xf32>
      %154 = tpu.matmul %147, %153, %cst_56 {dimension_numbers = #tpu.dot_dimension_numbers<[1], [0], [0], [1], [0, 0, 1, 1], [], []>} : vector<16x32xbf16>, vector<32x128xbf16>, vector<16x128xf32> -> vector<16x128xf32>
      %155 = arith.extf %147 : vector<16x32xbf16> to vector<16x32xf32>
      %cst_57 = arith.constant dense<0xFF800000> : vector<16xf32>
      %156 = vector.multi_reduction <maximumf>, %155, %cst_57 [1] : vector<16x32xf32> to vector<16xf32>
      %157 = vector.shape_cast %156 : vector<16xf32> to vector<16x1xf32>
      %158 = vector.broadcast %157 : vector<16x1xf32> to vector<16x32xf32>
      %159 = arith.subf %155, %158 : vector<16x32xf32>
      %160 = math.exp %159 : vector<16x32xf32>
      %cst_58 = arith.constant dense<0.000000e+00> : vector<16xf32>
      %161 = vector.multi_reduction <add>, %160, %cst_58 [1] : vector<16x32xf32> to vector<16xf32>
      %162 = vector.shape_cast %161 : vector<16xf32> to vector<16x1xf32>
      %163 = math.log %162 : vector<16x1xf32>
      %164 = arith.addf %157, %163 : vector<16x1xf32>
      %165 = vector.broadcast %164 : vector<16x1xf32> to vector<16x128xf32>
      %166 = arith.subf %154, %165 : vector<16x128xf32>
      %c96 = arith.constant 96 : index
      %c0_59 = arith.constant 0 : index
      %167 = vector.load %arg9[%c96, %c0_59] : memref<128x128xf32, #tpu.memory_space<vmem>>, vector<16x128xf32>
      tpu.vector_store %arg9[%c96, %c0_59], %166 {strides = array<i32>} : memref<128x128xf32, #tpu.memory_space<vmem>>, vector<16x128xf32>,
      %c7 = arith.constant 7 : index
      %c0_60 = arith.constant 0 : index
      %c0_61 = arith.constant 0 : index
      %168 = vector.load %arg4[%c7, %c0_60, %c0_61] : memref<8x16x32xbf16, #tpu.memory_space<vmem>>, vector<1x16x32xbf16>
      %169 = vector.shape_cast %168 : vector<1x16x32xbf16> to vector<16x32xbf16>
      %c7_62 = arith.constant 7 : index
      %c0_63 = arith.constant 0 : index
      %170 = vector.load %arg5[%c7_62, %c0_63] : memref<8x128xi32, #tpu.memory_space<vmem>>, vector<1x128xi32>
      %171 = vector.broadcast %170 : vector<1x128xi32> to vector<32x128xi32>
      %172 = arith.cmpi eq, %13, %171 : vector<32x128xi32>
      %173 = arith.extui %172 : vector<32x128xi1> to vector<32x128xi32>
      %174 = arith.sitofp %173 : vector<32x128xi32> to vector<32x128xf32>
      %175 = arith.truncf %174 : vector<32x128xf32> to vector<32x128xbf16>
      %cst_64 = arith.constant dense<0.000000e+00> : vector<16x128xf32>
      %176 = tpu.matmul %169, %175, %cst_64 {dimension_numbers = #tpu.dot_dimension_numbers<[1], [0], [0], [1], [0, 0, 1, 1], [], []>} : vector<16x32xbf16>, vector<32x128xbf16>, vector<16x128xf32> -> vector<16x128xf32>
      %177 = arith.extf %169 : vector<16x32xbf16> to vector<16x32xf32>
      %cst_65 = arith.constant dense<0xFF800000> : vector<16xf32>
      %178 = vector.multi_reduction <maximumf>, %177, %cst_65 [1] : vector<16x32xf32> to vector<16xf32>
      %179 = vector.shape_cast %178 : vector<16xf32> to vector<16x1xf32>
      %180 = vector.broadcast %179 : vector<16x1xf32> to vector<16x32xf32>
      %181 = arith.subf %177, %180 : vector<16x32xf32>
      %182 = math.exp %181 : vector<16x32xf32>
      %cst_66 = arith.constant dense<0.000000e+00> : vector<16xf32>
      %183 = vector.multi_reduction <add>, %182, %cst_66 [1] : vector<16x32xf32> to vector<16xf32>
      %184 = vector.shape_cast %183 : vector<16xf32> to vector<16x1xf32>
      %185 = math.log %184 : vector<16x1xf32>
      %186 = arith.addf %179, %185 : vector<16x1xf32>
      %187 = vector.broadcast %186 : vector<16x1xf32> to vector<16x128xf32>
      %188 = arith.subf %176, %187 : vector<16x128xf32>
      %c112 = arith.constant 112 : index
      %c0_67 = arith.constant 0 : index
      %189 = vector.load %arg9[%c112, %c0_67] : memref<128x128xf32, #tpu.memory_space<vmem>>, vector<16x128xf32>
      tpu.vector_store %arg9[%c112, %c0_67], %188 {strides = array<i32>} : memref<128x128xf32, #tpu.memory_space<vmem>>, vector<16x128xf32>,
      %c0_68 = arith.constant 0 : index
      %c0_69 = arith.constant 0 : index
      %190 = vector.load %arg6[%c0_68, %c0_69] : memref<8x1xi32, #tpu.memory_space<vmem>>, vector<8x1xi32>
      %191 = arith.subi %3, %0 : i32
      %c16_i32_70 = arith.constant 16 : i32
      %192 = arith.minsi %191, %c16_i32_70 : i32
      %c0_71 = arith.constant 0 : index
      %c0_72 = arith.constant 0 : index
      %193 = vector.load %arg10[%c0_71, %c0_72] : memref<8x128xf32, #tpu.memory_space<vmem>>, vector<8x128xf32>
      %c0_73 = arith.constant 0 : index
      %c0_74 = arith.constant 0 : index
      %194 = tpu.strided_load %arg9[%c0_73, %c0_74] {strides = array<i32: 16, 1>} : memref<128x128xf32, #tpu.memory_space<vmem>>, vector<8x128xf32>
      %c0_i32_75 = arith.constant 0 : i32
      %195 = arith.subi %192, %c0_i32_75 : i32
      %196 = arith.addi %c0_i32_75, %195 : i32
      %c1_i32 = arith.constant 1 : i32
      %197:2 = scf.for %arg11 = %c0_i32_75 to %196 step %c1_i32 iter_args(%arg12 = %193, %arg13 = %194) -> (vector<8x128xf32>, vector<8x128xf32>)  : i32 {
        %199 = arith.addi %0, %arg11 : i32
        %c1_i32_78 = arith.constant 1 : i32
        %200 = arith.addi %arg11, %c1_i32_78 : i32
        %c15_i32 = arith.constant 15 : i32
        %201 = arith.minsi %200, %c15_i32 : i32
        %202 = arith.index_cast %201 : i32 to index
        %c0_79 = arith.constant 0 : index
        %203 = tpu.strided_load %arg9[%202, %c0_79] {strides = array<i32: 16, 1>} : memref<128x128xf32, #tpu.memory_space<vmem>>, vector<8x128xf32>
        %c1_i32_80 = arith.constant 1 : i32
        %204 = tpu.dynamic_rotate %arg12 by %c1_i32_80 dim 1 : vector<8x128xf32>, i32 -> vector<8x128xf32>
        %c0_i32_81 = arith.constant 0 : i32
        %205 = arith.cmpi eq, %199, %c0_i32_81 : i32
        %cst_82 = arith.constant 0.000000e+00 : f32
        %cst_83 = arith.constant -1.000000e+30 : f32
        %206 = arith.select %205, %cst_82, %cst_83 : f32
        %c0_i32_84 = arith.constant 0 : i32
        %207 = vector.broadcast %c0_i32_84 : i32 to vector<1x128xi32>
        %208 = arith.cmpi eq, %1, %207 : vector<1x128xi32>
        %209 = vector.shape_cast %208 : vector<1x128xi1> to vector<1x128xi1>
        %210 = vector.broadcast %209 : vector<1x128xi1> to vector<8x128xi1>
        %211 = vector.broadcast %206 : f32 to vector<8x128xf32>
        %212 = arith.select %210, %211, %204 : vector<8x128xi1>, vector<8x128xf32>
        %213 = arith.maximumf %arg12, %212 : vector<8x128xf32>
        %214 = arith.addf %arg13, %213 : vector<8x128xf32>
        %215 = arith.subf %arg12, %212 : vector<8x128xf32>
        %216 = math.absf %215 : vector<8x128xf32>
        %cst_85 = arith.constant 0.000000e+00 : f32
        %217 = vector.broadcast %cst_85 : f32 to vector<8x128xf32>
        %218 = arith.subf %217, %216 : vector<8x128xf32>
        %219 = math.exp %218 : vector<8x128xf32>
        %cst_86 = arith.constant 1.000000e+00 : f32
        %220 = vector.broadcast %cst_86 : f32 to vector<8x128xf32>
        %221 = arith.addf %220, %219 : vector<8x128xf32>
        %222 = math.log %221 : vector<8x128xf32>
        %223 = arith.addf %214, %222 : vector<8x128xf32>
        %224 = vector.broadcast %199 : i32 to vector<8x1xi32>
        %225 = arith.cmpi slt, %224, %190 : vector<8x1xi32>
        %226 = vector.shape_cast %225 : vector<8x1xi1> to vector<8x1xi1>
        %227 = vector.broadcast %226 : vector<8x1xi1> to vector<8x128xi1>
        %228 = arith.select %227, %223, %arg12 : vector<8x128xi1>, vector<8x128xf32>
        scf.yield %228, %203 : vector<8x128xf32>, vector<8x128xf32>
      }
      %c0_76 = arith.constant 0 : index
      %c0_77 = arith.constant 0 : index
      %198 = vector.load %arg10[%c0_76, %c0_77] : memref<8x128xf32, #tpu.memory_space<vmem>>, vector<8x128xf32>
      tpu.vector_store %arg10[%c0_76, %c0_77], %197#0 {strides = array<i32>} : memref<8x128xf32, #tpu.memory_space<vmem>>, vector<8x128xf32>,
    } else {
    }
    %c0_i32_2 = arith.constant 0 : i32
    %10 = arith.cmpi eq, %arg1, %c0_i32_2 : i32
    %11 = arith.extui %10 : i1 to i32
    %c0_i32_3 = arith.constant 0 : i32
    %12 = arith.cmpi ne, %11, %c0_i32_3 : i32
    scf.if %12 {
      %c0 = arith.constant 0 : index
      %c0_4 = arith.constant 0 : index
      %13 = vector.load %arg10[%c0, %c0_4] : memref<8x128xf32, #tpu.memory_space<vmem>>, vector<8x128xf32>
      %c0_5 = arith.constant 0 : index
      %c0_6 = arith.constant 0 : index
      %14 = vector.load %arg7[%c0_5, %c0_6] : memref<8x1xi32, #tpu.memory_space<vmem>>, vector<8x1xi32>
      %c1_i32 = arith.constant 1 : i32
      %15 = vector.broadcast %c1_i32 : i32 to vector<8x1xi32>
      %16 = arith.subi %14, %15 : vector<8x1xi32>
      %17 = vector.broadcast %1 : vector<1x128xi32> to vector<8x128xi32>
      %18 = vector.broadcast %16 : vector<8x1xi32> to vector<8x128xi32>
      %19 = arith.cmpi eq, %17, %18 : vector<8x128xi32>
      %cst = arith.constant -1.000000e+30 : f32
      %20 = vector.broadcast %cst : f32 to vector<8x128xf32>
      %21 = arith.select %19, %13, %20 : vector<8x128xi1>, vector<8x128xf32>
      %cst_7 = arith.constant dense<0xFF800000> : vector<8xf32>
      %22 = vector.multi_reduction <maximumf>, %21, %cst_7 [1] : vector<8x128xf32> to vector<8xf32>
      %23 = vector.shape_cast %22 : vector<8xf32> to vector<8x1xf32>
      %cst_8 = arith.constant 0.000000e+00 : f32
      %24 = vector.broadcast %cst_8 : f32 to vector<8x1xf32>
      %25 = arith.subf %24, %23 : vector<8x1xf32>
      %26 = vector.shape_cast %25 : vector<8x1xf32> to vector<8x1xf32>
      %27 = vector.broadcast %26 : vector<8x1xf32> to vector<8x128xf32>
      %c0_9 = arith.constant 0 : index
      %c0_10 = arith.constant 0 : index
      %28 = vector.load %arg8[%c0_9, %c0_10] : memref<8x128xf32, #tpu.memory_space<vmem>>, vector<8x128xf32>
      tpu.vector_store %arg8[%c0_9, %c0_10], %27 {strides = array<i32>} : memref<8x128xf32, #tpu.memory_space<vmem>>, vector<8x128xf32>,
    } else {
    }
    return
  }
  func.func @transform_0(%arg0: i32, %arg1: i32, %arg2: memref<1xi32, #tpu.memory_space<smem>>, %arg3: memref<1xi32, #tpu.memory_space<smem>>) -> (i32, i32, i32) {
    %0 = arith.index_cast %arg0 : i32 to index
    %1 = memref.load %arg3[%0] : memref<1xi32, #tpu.memory_space<smem>>
    %2 = arith.minsi %arg1, %1 : i32
    %c0_i32 = arith.constant 0 : i32
    %c0_i32_0 = arith.constant 0 : i32
    return %arg0, %2, %c0_i32 : i32, i32, i32
  }
  func.func @transform_1(%arg0: i32, %arg1: i32, %arg2: memref<1xi32, #tpu.memory_space<smem>>, %arg3: memref<1xi32, #tpu.memory_space<smem>>) -> (i32, i32) {
    %c0_i32 = arith.constant 0 : i32
    %c0_i32_0 = arith.constant 0 : i32
    return %arg0, %c0_i32 : i32, i32
  }
  func.func @transform_2(%arg0: i32, %arg1: i32, %arg2: memref<1xi32, #tpu.memory_space<smem>>, %arg3: memref<1xi32, #tpu.memory_space<smem>>) -> (i32, i32) {
    %c0_i32 = arith.constant 0 : i32
    %c0_i32_0 = arith.constant 0 : i32
    return %arg0, %c0_i32 : i32, i32
  }
  func.func @transform_3(%arg0: i32, %arg1: i32, %arg2: memref<1xi32, #tpu.memory_space<smem>>, %arg3: memref<1xi32, #tpu.memory_space<smem>>) -> (i32, i32) {
    %c0_i32 = arith.constant 0 : i32
    %c0_i32_0 = arith.constant 0 : i32
    return %arg0, %c0_i32 : i32, i32
  }
  func.func @transform_4(%arg0: i32, %arg1: i32, %arg2: memref<1xi32, #tpu.memory_space<smem>>, %arg3: memref<1xi32, #tpu.memory_space<smem>>) -> (i32, i32) {
    %c0_i32 = arith.constant 0 : i32
    %c0_i32_0 = arith.constant 0 : i32
    return %arg0, %c0_i32 : i32, i32
  }
}

</mosaic_0001>

<bundles_post_ra>
// kernel: tpu_custom_call.1
= control target key start
LH: loop header
LB: loop body
LE: loop exit
PB: predicated region body
PF: predicated region fallthrough
CT: control target
= control target key end

     0   :  { %13 = vsyncpa [#allocation8], 0  ;;  %s1881_s0 = inlined_call_operand.<no memory space> [shape: s32[1], index: 0, kind: input, shape index: {}]   ;;  %s1882_s1 = inlined_call_operand.<no memory space> [shape: s32[1], index: 1, kind: input, shape index: {}]   ;;  %s1883_s2 = inlined_call_operand.hbm [shape: bf16[8,16,32], index: 2, kind: input, shape index: {}]   ;;  %s1884_s3 = inlined_call_operand.vmem [shape: s32[8,128], index: 3, kind: input, shape index: {}]   ;;  %s1885_s4 = inlined_call_operand.vmem [shape: s32[8,1], index: 4, kind: input, shape index: {}]   ;;  %s1886_s5 = inlined_call_operand.vmem [shape: s32[8,1], index: 5, kind: input, shape index: {}]   ;;  %s1887_s6 = inlined_call_operand.hbm [shape: f32[8,128], index: 6, kind: output, shape index: {}]  }
   0x1   :  { %14 = vsyncpa [#allocation9], 0  ;;  %p978_p0 = scmp.gt.s32.totalorder %s1882_s1, 0  ;;  %s1376_s23 = smov [#allocation7]  }
   0x2   :  { %s26_s24 = sshll.u32 %s1376_s23, 4  ;;  %s1296_s10 = scalar_lea.hbm %s1883_s2, 1024  ;;  %s27_s24 = int_to_ptr.vmem [resolvable:$true] %s26_s24 }
   0x3   :  { %s1894_s1 = smov (%p978_p0, %s1882_s1), 0 }
   0x4   :  { %s1073_s27 = sshll.u32 %s1894_s1, 7 }
   0x5   :  { %s25_s30 = scalar_lea.hbm %s1883_s2, %s1073_s27 }
   0x6   :  { %s1294_s7 = scalar_lea.hbm %s25_s30, 1024  ;;  %p1297_p2 = scmp.lt.u32.totalorder %s25_s30, %s1883_s2 }
   0x7   :  { %p1295_p1 = scmp.ne.s32.totalorder %s25_s30, %s1294_s7  ;;  %p1298_p3 = scmp.lt.u32.totalorder %s1296_s10, %s1294_s7 }
   0x8   :  { %p1300_p5 = scmp.lt.u32.totalorder %s1294_s7, %s25_s30 }
   0x9   :  { %p1299_p4 = por %p1298_p3, %p1297_p2 }
   0xb   :  { %p1301_p6 = por %p1300_p5, %p1299_p4 }
   0xd   :  { %p1302_p7 = pnand %p1301_p6, %p1295_p1 }
   0xf   :  { %1305 = shalt.err (!%p1302_p7)
}
  0x10   :  { %s1306_s1 = scalar_lea.vmem %s27_s24, 1024  ;;  %p1311_p9 = scmp.lt.s32.totalorder %s27_s24, %s27_s24 }
  0x11   :  { %p1307_p8 = scmp.ne.s32.totalorder %s27_s24, %s1306_s1  ;;  %p1312_p10 = scmp.lt.s32.totalorder %s1306_s1, %s1306_s1 }
  0x13   :  { %p1313_p11 = por %p1312_p10, %p1311_p9 }
  0x15   :  { %p1314_p12 = pnand %p1313_p11, %p1307_p8 }
  0x17   :  { %1317 = shalt.err (!%p1314_p12)
}
  0x18   :  { %s1377_s13 = smov 64   ;;  %s1378_s14 = smov 4  }
  0x19   :  { %32 = dma.hbm_to_vmem [thread:$0]  %s25_s30, 1024, %s27_s24, [#allocation8], %s1377_s13, %s1377_s13, %s1378_s14  }
  0x1a   :  { %1356 = dma.done.wait [#allocation8], 1024  }
  0x1b   :  { %1357 = vsyncadd [#allocation8], 4294966272  ;;  %v48_v0 = vlaneseq  ;;  %v1379_v1 = vmov -1e+30   ;;  %p982_p13 = scmp.le.s32.totalorder %s1881_s0, 0 }
  0x1c   :  { %55 = vst [vmem:[#allocation3] sm:$0xff] %v1379_v1  ;;  %v1446_v3 = vld [vmem:[#allocation7] sm:$0xff] (!%p982_p13)   ;;  %vm91_vm0 = vcmask (!%p982_p13), 261120   ;;  %v1448_v4 = vld [vmem:[#allocation7 + $0x10] sm:$0xff] (!%p982_p13)   ;;  %v1450_v5 = vld [vmem:[#allocation7 + $0x8] sm:$0xff] (!%p982_p13)   ;;  %v1380_v10 = vmov (!%p982_p13), 0.0  }
  0x1d   :  { %v1437_v2 = vand.u32 127, %v48_v0  ;;  %59 = sbr.rel (%p982_p13) target bundleno = 539 (0x21b), region = 29  ;;  %v136_v6 = vunpack.c.l.bf16 (!%p982_p13), %v1446_v3  ;;  %v338_v7 = vunpack.c.l.bf16 (!%p982_p13), %v1448_v4  ;;  %v237_v8 = vunpack.c.l.bf16 (!%p982_p13), %v1450_v5  ;;  %v1455_v9 = vld [vmem:[#allocation7 + $0x18] sm:$0xff] (!%p982_p13)   ;;  %1101 = vmatprep.subr.bf16.mxu0 (!%p982_p13), %v1380_v10  ;;  %1109 = vmatprep.subr.bf16.mxu1 (!%p982_p13), %v1380_v10  ;;  %v1460_v12 = vld [vmem:[#allocation7 + $0x20] sm:$0xff] (!%p982_p13)   ;;  %v1462_v13 = vld [vmem:[#allocation7 + $0x28] sm:$0xff] (!%p982_p13)   ;;  %p875_p0 = scmp.lt.s32.totalorder (!%p982_p13), %s1881_s0, 16 }
  0x1e   :  { %v439_v11 = vunpack.c.l.bf16 (!%p982_p13), %v1455_v9  ;;  %v1470_v16 = vld [vmem:[#allocation7 + $0x30] sm:$0xff] (!%p982_p13)   ;;  %v540_v19 = vunpack.c.l.bf16 (!%p982_p13), %v1460_v12  ;;  %v641_v20 = vunpack.c.l.bf16 (!%p982_p13), %v1462_v13  ;;  %v1480_v21 = vld [vmem:[#allocation7 + $0x38] sm:$0xff] (!%p982_p13)   ;;  %v1482_v22 = vshrl.u32 (!%p982_p13), %v48_v0, 7 }
  0x1f   :  { %v138_v14 = vsel (!%p982_p13), %vm91_vm0, %v136_v6, -inf  ;;  %v340_v15 = vsel (!%p982_p13), %vm91_vm0, %v338_v7, -inf  ;;  %v239_v17 = vsel (!%p982_p13), %vm91_vm0, %v237_v8, -inf  ;;  %v742_v23 = vunpack.c.l.bf16 (!%p982_p13), %v1470_v16  ;;  %v983_v24 = vld [vmem:[%s1884_s3] ss:$0 sm:$0xff] (!%p982_p13) }
  0x20   :  { %139 = vmax.xlane.f32.xlu0 (!%p982_p13), %v138_v14  ;;  %341 = vmax.xlane.f32.xlu1 (!%p982_p13), %v340_v15  ;;  %v441_v18 = vsel (!%p982_p13), %vm91_vm0, %v439_v11, -inf  ;;  %v542_v25 = vsel (!%p982_p13), %vm91_vm0, %v540_v19, -inf  ;;  %v643_v26 = vsel (!%p982_p13), %vm91_vm0, %v641_v20, -inf  ;;  %v843_v27 = vunpack.c.l.bf16 (!%p982_p13), %v1480_v21  ;;  %v994_v28 = vld [vmem:[%s1884_s3 + $0x1] ss:$0 sm:$0xff] (!%p982_p13) }
  0x21   :  { %v137_v29 = vunpack.c.h.bf16 (!%p982_p13), %v1446_v3  ;;  %v1500_v30 = vadd.s32 (!%p982_p13), 8, %v1482_v22  ;;  %vm72_vm1 = vcmp.eq.s32.totalorder (!%p982_p13), %v1482_v22, %v983_v24  ;;  %v744_v31 = vsel (!%p982_p13), %vm91_vm0, %v742_v23, -inf  ;;  %v1005_v36 = vld [vmem:[%s1884_s3 + $0x2] ss:$0 sm:$0xff] (!%p982_p13)  ;;  %v1016_v43 = vld [vmem:[%s1884_s3 + $0x3] ss:$0 sm:$0xff] (!%p982_p13) }
  0x22   :  { %v1507_v32 = vadd.s32 (!%p982_p13), 16, %v1482_v22  ;;  %v1510_v33 = vadd.s32 (!%p982_p13), 24, %v1482_v22  ;;  %v238_v34 = vunpack.c.h.bf16 (!%p982_p13), %v1450_v5  ;;  %vm174_vm3 = vcmp.eq.s32.totalorder (!%p982_p13), %v1482_v22, %v994_v28  ;;  %v1027_v48 = vld [vmem:[%s1884_s3 + $0x4] ss:$0 sm:$0xff] (!%p982_p13)  ;;  %v1038_v54 = vld [vmem:[%s1884_s3 + $0x5] ss:$0 sm:$0xff] (!%p982_p13) }
  0x23   :  { %vm73_vm2 = vcmp.eq.s32.totalorder (!%p982_p13), %v1500_v30, %v983_v24  ;;  %vm175_vm4 = vcmp.eq.s32.totalorder (!%p982_p13), %v1500_v30, %v994_v28  ;;  %v845_v35 = vsel (!%p982_p13), %vm91_vm0, %v843_v27, -inf  ;;  %v1381_v37 = vmov (!%p982_p13), 1.0|1.0   ;;  %v1049_v57 = vld [vmem:[%s1884_s3 + $0x6] ss:$0 sm:$0xff] (!%p982_p13) }
  0x24   :  { %240 = vmax.xlane.f32.xlu0 %v239_v17  ;;  %442 = vmax.xlane.f32.xlu1 %v441_v18  ;;  %vm989_vm5 = vmpackc.low %vm73_vm2, %vm72_vm1  ;;  %vm74_vm6 = vcmp.eq.s32.totalorder %v1507_v32, %v983_v24  ;;  %vm75_vm7 = vcmp.eq.s32.totalorder %v1510_v33, %v983_v24  ;;  %vm1382_vm9 = vmmov 0   ;;  %vm176_vm11 = vcmp.eq.s32.totalorder %v1507_v32, %v994_v28  ;;  %v1060_v58 = vld [vmem:[%s1884_s3 + $0x7] ss:$0 sm:$0xff]  ;;  %s1782_s14 = scalar_select %p875_p0, %s1881_s0, 16 }
  0x25   :  { %1102 = vmatpush3.bf16.msk.msra.mxu0 %vm989_vm5, %v1381_v37  ;;  %vm1525_vm8 = vmpackc.low %vm75_vm7, %vm74_vm6  ;;  %1105 = vmatprep.mubr.msk.bf16.mxu0 %vm1382_vm9, %v1380_v10  ;;  %vm177_vm12 = vcmp.eq.s32.totalorder %v1510_v33, %v994_v28  ;;  %vm275_vm13 = vcmp.eq.s32.totalorder %v1482_v22, %v1005_v36  ;;  %vm276_vm14 = vcmp.eq.s32.totalorder %v1500_v30, %v1005_v36  ;;  %v141_v39 = vsel %vm91_vm0, %v137_v29, -inf  ;;  %s1851_s15 = smov (!%p982_p13), 0  }
  0x26   :  { %1103 = vmatprep.subr.bf16.mxu0 %v1380_v10  ;;  %vm1000_vm10 = vmpackc.low %vm175_vm4, %vm174_vm3  ;;  %1113 = vmatprep.mubr.msk.bf16.mxu1 %vm1382_vm9, %v1380_v10  ;;  %v242_v40 = vsel %vm91_vm0, %v238_v34, -inf  ;;  %v339_v41 = vunpack.c.h.bf16 %v1448_v4  ;;  %v440_v42 = vunpack.c.h.bf16 %v1455_v9  ;;  %vm277_vm2 = vcmp.eq.s32.totalorder %v1507_v32, %v1005_v36 }
  0x27   :  { %1110 = vmatpush3.bf16.msk.msra.mxu1 %vm1000_vm10, %v1381_v37  ;;  %vm1002_vm15 = vmpackc.low %vm177_vm12, %vm176_vm11  ;;  %vm278_vm3 = vcmp.eq.s32.totalorder %v1510_v33, %v1005_v36  ;;  %vm376_vm4 = vcmp.eq.s32.totalorder %v1482_v22, %v1016_v43  ;;  %vm377_vm5 = vcmp.eq.s32.totalorder %v1500_v30, %v1016_v43  ;;  %v541_v46 = vunpack.c.h.bf16 %v1460_v12 }
  0x28   :  { %543 = vmax.xlane.f32.xlu0 %v542_v25  ;;  %644 = vmax.xlane.f32.xlu1 %v643_v26  ;;  %vm1011_vm1 = vmpackc.low %vm276_vm14, %vm275_vm13  ;;  %v343_v44 = vsel %vm91_vm0, %v339_v41, -inf  ;;  %v444_v45 = vsel %vm91_vm0, %v440_v42, -inf  ;;  %v642_v47 = vunpack.c.h.bf16 %v1462_v13  ;;  %vm379_vm10 = vcmp.eq.s32.totalorder %v1510_v33, %v1016_v43 }
  0x29   :  { %1104 = vmatpush3.bf16.msk.msra.mxu0 %vm1525_vm8, %v1381_v37  ;;  %1111 = vmatprep.subr.bf16.mxu1 %v1380_v10  ;;  %vm1579_vm6 = vmpackc.low %vm278_vm3, %vm277_vm2  ;;  %vm378_vm8 = vcmp.eq.s32.totalorder %v1507_v32, %v1016_v43  ;;  %vm477_vm11 = vcmp.eq.s32.totalorder %v1482_v22, %v1027_v48  ;;  %vm478_vm12 = vcmp.eq.s32.totalorder %v1500_v30, %v1027_v48  ;;  %v545_v50 = vsel %vm91_vm0, %v541_v46, -inf }
  0x2a   :  { %1117 = vmatprep.subr.bf16.mxu0 %v1380_v10  ;;  %vm1022_vm7 = vmpackc.low %vm377_vm5, %vm376_vm4  ;;  %v646_v51 = vsel %vm91_vm0, %v642_v47, -inf  ;;  %v743_v52 = vunpack.c.h.bf16 %v1470_v16  ;;  %v844_v53 = vunpack.c.h.bf16 %v1480_v21  ;;  %vm578_vm2 = vcmp.eq.s32.totalorder %v1482_v22, %v1038_v54 }
  0x2b   :  { %1112 = vmatpush3.bf16.msk.msra.mxu1 %vm1002_vm15, %v1381_v37  ;;  %vm1024_vm13 = vmpackc.low %vm379_vm10, %vm378_vm8  ;;  %vm479_vm15 = vcmp.eq.s32.totalorder %v1507_v32, %v1027_v48  ;;  %vm579_vm3 = vcmp.eq.s32.totalorder %v1500_v30, %v1038_v54  ;;  %vm679_vm8 = vcmp.eq.s32.totalorder %v1482_v22, %v1049_v57  ;;  %vm680_vm10 = vcmp.eq.s32.totalorder %v1500_v30, %v1049_v57 }
  0x2c   :  { %745 = vmax.xlane.f32.xlu0 %v744_v31  ;;  %846 = vmax.xlane.f32.xlu1 %v845_v35  ;;  %vm1033_vm14 = vmpackc.low %vm478_vm12, %vm477_vm11  ;;  %v747_v55 = vsel %vm91_vm0, %v743_v52, -inf  ;;  %v848_v56 = vsel %vm91_vm0, %v844_v53, -inf }
  0x2d   :  { %1106 = vmatmul.mubr.msk.bf16.vlgmr.msra.gmra.mrb[0].mxu0 %vm91_vm0, %v1446_v3  ;;  %1125 = vmatprep.subr.bf16.mxu1 %v1380_v10  ;;  %vm1044_vm5 = vmpackc.low %vm579_vm3, %vm578_vm2 }
  0x2e   :  { %1118 = vmatpush3.bf16.msk.msra.mxu0 %vm1011_vm1, %v1381_v37  ;;  %1121 = vmatprep.mubr.msk.bf16.mxu0 %vm1382_vm9, %v1380_v10  ;;  %vm480_vm1 = vcmp.eq.s32.totalorder %v1510_v33, %v1027_v48  ;;  %vm1055_vm12 = vmpackc.low %vm680_vm10, %vm679_vm8 }
  0x2f   :  { %1119 = vmatprep.subr.bf16.mxu0 %v1380_v10  ;;  %1114 = vmatmul.mubr.msk.bf16.vlgmr.msra.gmra.mrb[0].mxu1 %vm91_vm0, %v1450_v5  ;;  %vm1035_vm4 = vmpackc.low %vm480_vm1, %vm479_vm15  ;;  %vm780_vm15 = vcmp.eq.s32.totalorder %v1482_v22, %v1060_v58  ;;  %vm781_vm1 = vcmp.eq.s32.totalorder %v1500_v30, %v1060_v58 }
  0x30   :  { %142 = vmax.xlane.f32.xlu0 %v141_v39  ;;  %243 = vmax.xlane.f32.xlu1 %v242_v40  ;;  %vm1066_vm3 = vmpackc.low %vm781_vm1, %vm780_vm15 }
  0x31   :  { %1126 = vmatpush3.bf16.msk.msra.mxu1 %vm1022_vm7, %v1381_v37  ;;  %1129 = vmatprep.mubr.msk.bf16.mxu1 %vm1382_vm9, %v1380_v10  ;;  %vm581_vm7 = vcmp.eq.s32.totalorder %v1510_v33, %v1038_v54 }
  0x32   :  { %1120 = vmatpush3.bf16.msk.msra.mxu0 %vm1579_vm6, %v1381_v37  ;;  %1127 = vmatprep.subr.bf16.mxu1 %v1380_v10  ;;  %vm580_vm6 = vcmp.eq.s32.totalorder %v1507_v32, %v1038_v54 }
  0x33   :  { %1133 = vmatprep.subr.bf16.mxu0 %v1380_v10  ;;  %vm1046_vm11 = vmpackc.low %vm581_vm7, %vm580_vm6 }
  0x34   :  { %344 = vmax.xlane.f32.xlu0 %v343_v44  ;;  %445 = vmax.xlane.f32.xlu1 %v444_v45 }
  0x35   :  { %1122 = vmatmul.mubr.msk.bf16.vlgmr.msra.gmra.mrb[4].mxu0 %vm91_vm0, %v1448_v4  ;;  %1128 = vmatpush3.bf16.msk.msra.mxu1 %vm1024_vm13, %v1381_v37  ;;  %vm681_vm13 = vcmp.eq.s32.totalorder %v1507_v32, %v1049_v57 }
  0x36   :  { %1134 = vmatpush3.bf16.msk.msra.mxu0 %vm1033_vm14, %v1381_v37  ;;  %1141 = vmatprep.subr.bf16.mxu1 %v1380_v10  ;;  %vm682_vm14 = vcmp.eq.s32.totalorder %v1510_v33, %v1049_v57 }
  0x37   :  { %1135 = vmatprep.subr.bf16.mxu0 %v1380_v10  ;;  %1137 = vmatprep.mubr.msk.bf16.mxu0 %vm1382_vm9, %v1380_v10  ;;  %vm1057_vm2 = vmpackc.low %vm682_vm14, %vm681_vm13 }
  0x38   :  { %546 = vmax.xlane.f32.xlu0 %v545_v50  ;;  %647 = vmax.xlane.f32.xlu1 %v646_v51 }
  0x39   :  { %1130 = vmatmul.mubr.msk.bf16.vlgmr.msra.gmra.mrb[4].mxu1 %vm91_vm0, %v1455_v9 }
  0x3a   :  { %1136 = vmatpush3.bf16.msk.msra.mxu0 %vm1035_vm4, %v1381_v37  ;;  %1142 = vmatpush3.bf16.msk.msra.mxu1 %vm1044_vm5, %v1381_v37  ;;  %vm782_vm4 = vcmp.eq.s32.totalorder %v1507_v32, %v1060_v58  ;;  %vm783_vm5 = vcmp.eq.s32.totalorder %v1510_v33, %v1060_v58 }
  0x3b   :  { %1143 = vmatprep.subr.bf16.mxu1 %v1380_v10  ;;  %1149 = vmatprep.subr.bf16.mxu0 %v1380_v10  ;;  %vm1068_vm6 = vmpackc.low %vm783_vm5, %vm782_vm4 }
  0x3c   :  { %748 = vmax.xlane.f32.xlu0 %v747_v55  ;;  %849 = vmax.xlane.f32.xlu1 %v848_v56 }
  0x3d   :  { %1145 = vmatprep.mubr.msk.bf16.mxu1 %vm1382_vm9, %v1380_v10  ;;  %1138 = vmatmul.mubr.msk.bf16.vlgmr.msra.gmra.mrb[8].mxu0 %vm91_vm0, %v1460_v12 }
  0x3e   :  { %1144 = vmatpush3.bf16.msk.msra.mxu1 %vm1046_vm11, %v1381_v37  ;;  %1150 = vmatpush3.bf16.msk.msra.mxu0 %vm1055_vm12, %v1381_v37 }
  0x3f   :  { %1151 = vmatprep.subr.bf16.mxu0 %v1380_v10  ;;  %1157 = vmatprep.subr.bf16.mxu1 %v1380_v10 }
  0x40   :  { %1153 = vmatprep.mubr.msk.bf16.mxu0 %vm1382_vm9, %v1380_v10 }
  0x41   :  { %1146 = vmatmul.mubr.msk.bf16.vlgmr.msra.gmra.mrb[8].mxu1 %vm91_vm0, %v1462_v13 }
  0x42   :  { %1152 = vmatpush3.bf16.msk.msra.mxu0 %vm1057_vm2, %v1381_v37  ;;  %1158 = vmatpush3.bf16.msk.msra.mxu1 %vm1066_vm3, %v1381_v37 }
  0x43   :  { %1159 = vmatprep.subr.bf16.mxu1 %v1380_v10  ;;  %1161 = vmatprep.mubr.msk.bf16.mxu1 %vm1382_vm9, %v1380_v10 }
  0x45   :  { %1154 = vmatmul.mubr.msk.bf16.vlgmr.msra.gmra.mrb[12].mxu0 %vm91_vm0, %v1470_v16 }
  0x46   :  { %1160 = vmatpush3.bf16.msk.msra.mxu1 %vm1068_vm6, %v1381_v37 }
  0x49   :  { %1162 = vmatmul.mubr.msk.bf16.vlgmr.msra.gmra.mrb[12].mxu1 %vm91_vm0, %v1480_v21 }
  0xad   :  { %v1673_v59 = vpop.xlane.xlu0 %139  ;;  %v1675_v60 = vpop.xlane.xlu1 %341 }
  0xae   :  { %v144_v61 = vsub.f32 %v136_v6, %v1673_v59  ;;  %v346_v62 = vsub.f32 %v338_v7, %v1675_v60 }
  0xb0   :  { %v146_v63 = vmul.f32 1.442695, %v144_v61  ;;  %v348_v0 = vmul.f32 1.442695, %v346_v62 }
  0xb1   :  { %v1683_v1 = vpop.xlane.xlu0 %240  ;;  %v1685_v10 = vpop.xlane.xlu1 %442 }
  0xb2   :  { %1224 = vpow2.f32 %v146_v63  ;;  %v245_v14 = vsub.f32 %v237_v8, %v1683_v1  ;;  %v447_v15 = vsub.f32 %v439_v11, %v1685_v10 }
  0xb3   :  { %1226 = vpow2.f32 %v348_v0 }
  0xb4   :  { %v247_v6 = vmul.f32 1.442695, %v245_v14  ;;  %v449_v17 = vmul.f32 1.442695, %v447_v15 }
  0xb5   :  { %v1693_v18 = vpop.xlane.xlu0 %543  ;;  %v1695_v7 = vpop.xlane.xlu1 %644 }
  0xb6   :  { %1228 = vpow2.f32 %v247_v6  ;;  %v548_v22 = vsub.f32 %v540_v19, %v1693_v18  ;;  %v649_v8 = vsub.f32 %v641_v20, %v1695_v7 }
  0xb7   :  { %1230 = vpow2.f32 %v449_v17 }
  0xb8   :  { %v550_v24 = vmul.f32 1.442695, %v548_v22  ;;  %v651_v25 = vmul.f32 1.442695, %v649_v8 }
  0xb9   :  { %v1703_v11 = vpop.xlane.xlu0 %745  ;;  %v1705_v26 = vpop.xlane.xlu1 %846 }
  0xba   :  { %1232 = vpow2.f32 %v550_v24  ;;  %v750_v28 = vsub.f32 %v742_v23, %v1703_v11  ;;  %v851_v19 = vsub.f32 %v843_v27, %v1705_v26 }
  0xbb   :  { %1234 = vpow2.f32 %v651_v25 }
  0xbc   :  { %v1225_v30 = vpop.eup %1224  ;;  %v752_v31 = vmul.f32 1.442695, %v750_v28  ;;  %v853_v20 = vmul.f32 1.442695, %v851_v19 }
  0xbd   :  { %v1227_v32 = vpop.eup %1226  ;;  %v1713_v33 = vpop.xlane.xlu0 %142  ;;  %v150_v35 = vsel %vm91_vm0, %v1225_v30, 0.0 }
  0xbe   :  { %v1716_v36 = vpop.xlane.xlu1 %243  ;;  %1236 = vpow2.f32 %v752_v31  ;;  %v145_v23 = vsub.f32 %v137_v29, %v1713_v33  ;;  %151 = vadd.xlane.f32.xlu0 %v150_v35  ;;  %v352_v37 = vsel %vm91_vm0, %v1227_v32, 0.0  ;;  %v1775_v32 = vld [vmem:[%s1885_s4] sm:$0xff] }
  0xbf   :  { %v246_v27 = vsub.f32 %v238_v34, %v1716_v36  ;;  %1238 = vpow2.f32 %v853_v20  ;;  %v1777_v35 = vld [vmem:[#allocation3] sm:$0xff]  }
  0xc0   :  { %v1229_v38 = vpop.eup %1228  ;;  %v148_v39 = vmul.f32 1.442695, %v145_v23 }
  0xc1   :  { %v249_v40 = vmul.f32 1.442695, %v246_v27  ;;  %v1231_v43 = vpop.eup %1230  ;;  %v1725_v44 = vpop.xlane.xlu0 %344  ;;  %v251_v45 = vsel %vm91_vm0, %v1229_v38, 0.0 }
  0xc2   :  { %v1728_v48 = vpop.xlane.xlu1 %445  ;;  %1240 = vpow2.f32 %v148_v39  ;;  %v347_v3 = vsub.f32 %v339_v41, %v1725_v44  ;;  %353 = vadd.xlane.f32.xlu0 %v352_v37  ;;  %252 = vadd.xlane.f32.xlu1 %v251_v45  ;;  %v453_v29 = vsel %vm91_vm0, %v1231_v43, 0.0 }
  0xc3   :  { %v448_v5 = vsub.f32 %v440_v42, %v1728_v48  ;;  %1242 = vpow2.f32 %v249_v40 }
  0xc4   :  { %v1233_v34 = vpop.eup %1232  ;;  %v350_v49 = vmul.f32 1.442695, %v347_v3 }
  0xc5   :  { %v451_v50 = vmul.f32 1.442695, %v448_v5  ;;  %v1235_v51 = vpop.eup %1234  ;;  %v1737_v54 = vpop.xlane.xlu0 %546  ;;  %v554_v55 = vsel %vm91_vm0, %v1233_v34, 0.0 }
  0xc6   :  { %v1740_v56 = vpop.xlane.xlu1 %647  ;;  %1244 = vpow2.f32 %v350_v49  ;;  %v549_v4 = vsub.f32 %v541_v46, %v1737_v54  ;;  %454 = vadd.xlane.f32.xlu1 %v453_v29  ;;  %555 = vadd.xlane.f32.xlu0 %v554_v55  ;;  %v655_v41 = vsel %vm91_vm0, %v1235_v51, 0.0 }
  0xc7   :  { %v650_v9 = vsub.f32 %v642_v47, %v1740_v56  ;;  %1246 = vpow2.f32 %v451_v50 }
  0xc8   :  { %v1237_v42 = vpop.eup %1236  ;;  %v552_v57 = vmul.f32 1.442695, %v549_v4 }
  0xc9   :  { %v653_v58 = vmul.f32 1.442695, %v650_v9  ;;  %v1239_v61 = vpop.eup %1238  ;;  %v1749_v62 = vpop.xlane.xlu0 %748  ;;  %v756_v63 = vsel %vm91_vm0, %v1237_v42, 0.0 }
  0xca   :  { %v1752_v0 = vpop.xlane.xlu1 %849  ;;  %1248 = vpow2.f32 %v552_v57  ;;  %v751_v12 = vsub.f32 %v743_v52, %v1749_v62  ;;  %656 = vadd.xlane.f32.xlu1 %v655_v41  ;;  %757 = vadd.xlane.f32.xlu0 %v756_v63  ;;  %v857_v46 = vsel %vm91_vm0, %v1239_v61, 0.0 }
  0xcb   :  { %v852_v13 = vsub.f32 %v844_v53, %v1752_v0  ;;  %1250 = vpow2.f32 %v653_v58 }
  0xcc   :  { %v1241_v47 = vpop.eup %1240  ;;  %v754_v14 = vmul.f32 1.442695, %v751_v12 }
  0xcd   :  { %v855_v15 = vmul.f32 1.442695, %v852_v13  ;;  %v1243_v6 = vpop.eup %1242  ;;  %v153_v17 = vsel %vm91_vm0, %v1241_v47, 0.0 }
  0xce   :  { %1252 = vpow2.f32 %v754_v14  ;;  %858 = vadd.xlane.f32.xlu1 %v857_v46  ;;  %154 = vadd.xlane.f32.xlu0 %v153_v17  ;;  %v254_v16 = vsel %vm91_vm0, %v1243_v6, 0.0 }
  0xcf   :  { %1254 = vpow2.f32 %v855_v15 }
  0xd0   :  { %v1245_v52 = vpop.eup %1244 }
  0xd1   :  { %v1247_v22 = vpop.eup %1246  ;;  %v355_v21 = vsel %vm91_vm0, %v1245_v52, 0.0 }
  0xd2   :  { %255 = vadd.xlane.f32.xlu1 %v254_v16  ;;  %356 = vadd.xlane.f32.xlu0 %v355_v21  ;;  %v456_v53 = vsel %vm91_vm0, %v1247_v22, 0.0 }
  0xd4   :  { %v1249_v8 = vpop.eup %1248 }
  0xd5   :  { %v1251_v24 = vpop.eup %1250  ;;  %v557_v25 = vsel %vm91_vm0, %v1249_v8, 0.0 }
  0xd6   :  { %457 = vadd.xlane.f32.xlu1 %v456_v53  ;;  %558 = vadd.xlane.f32.xlu0 %v557_v25  ;;  %v658_v28 = vsel %vm91_vm0, %v1251_v24, 0.0 }
  0xd8   :  { %v1253_v19 = vpop.eup %1252 }
  0xd9   :  { %v1255_v30 = vpop.eup %1254  ;;  %v759_v31 = vsel %vm91_vm0, %v1253_v19, 0.0 }
  0xda   :  { %659 = vadd.xlane.f32.xlu1 %v658_v28  ;;  %760 = vadd.xlane.f32.xlu0 %v759_v31  ;;  %v860_v20 = vsel %vm91_vm0, %v1255_v30, 0.0 }
  0xde   :  { %861 = vadd.xlane.f32.xlu1 %v860_v20 }
 0x100   :  { %v129_v23 = vpop.f32.mrb[0].mxu0 }
 0x101   :  { %v1107_v27 = vpop.f32.mrb[1].mxu0 }
 0x102   :  { %v1784_v37 = vpop.f32.mrb[2].mxu0  ;;  %v1786_v39 = vpop.f32.mrb[0].mxu1 }
 0x103   :  { %v1108_v38 = vpop.f32.mrb[3].mxu0  ;;  %v1115_v40 = vpop.f32.mrb[1].mxu1 }
 0x104   :  { %v1788_v43 = vpop.f32.mrb[2].mxu1 }
 0x105   :  { %v1116_v45 = vpop.f32.mrb[3].mxu1 }
 0x108   :  { %v1790_v3 = vpop.f32.mrb[4].mxu0 }
 0x109   :  { %v1123_v5 = vpop.f32.mrb[5].mxu0 }
 0x10a   :  { %v1792_v29 = vpop.f32.mrb[6].mxu0 }
 0x10b   :  { %v1124_v34 = vpop.f32.mrb[7].mxu0 }
 0x10c   :  { %v1794_v49 = vpop.f32.mrb[4].mxu1 }
 0x10d   :  { %v1131_v50 = vpop.f32.mrb[5].mxu1 }
 0x10e   :  { %v1796_v51 = vpop.f32.mrb[6].mxu1 }
 0x10f   :  { %v1132_v55 = vpop.f32.mrb[7].mxu1 }
 0x110   :  { %v1798_v4 = vpop.f32.mrb[8].mxu0 }
 0x111   :  { %v1139_v9 = vpop.f32.mrb[9].mxu0 }
 0x112   :  { %v1800_v41 = vpop.f32.mrb[10].mxu0 }
 0x113   :  { %v1140_v42 = vpop.f32.mrb[11].mxu0 }
 0x114   :  { %v1802_v57 = vpop.f32.mrb[8].mxu1 }
 0x115   :  { %v1147_v58 = vpop.f32.mrb[9].mxu1 }
 0x116   :  { %v1804_v61 = vpop.f32.mrb[10].mxu1 }
 0x117   :  { %v1148_v63 = vpop.f32.mrb[11].mxu1 }
 0x118   :  { %v1806_v12 = vpop.f32.mrb[12].mxu0 }
 0x119   :  { %v1155_v13 = vpop.f32.mrb[13].mxu0 }
 0x11a   :  { %v1808_v46 = vpop.f32.mrb[14].mxu0 }
 0x11b   :  { %v1156_v47 = vpop.f32.mrb[15].mxu0 }
 0x11c   :  { %v1810_v14 = vpop.f32.mrb[12].mxu1 }
 0x11d   :  { %v1163_v15 = vpop.f32.mrb[13].mxu1 }
 0x11e   :  { %v1812_v6 = vpop.f32.mrb[14].mxu1 }
 0x11f   :  { %v1164_v17 = vpop.f32.mrb[15].mxu1 }
 0x14b   :  { %v152_v16 = vpop.xlane.xlu0 %151 }
 0x14c   :  { %1256 = vlog2.f32 %v152_v16 }
 0x14f   :  { %v253_v52 = vpop.xlane.xlu1 %252  ;;  %v354_v22 = vpop.xlane.xlu0 %353 }
 0x150   :  { %1258 = vlog2.f32 %v253_v52 }
 0x151   :  { %1260 = vlog2.f32 %v354_v22 }
 0x153   :  { %v455_v21 = vpop.xlane.xlu1 %454  ;;  %v556_v53 = vpop.xlane.xlu0 %555 }
 0x154   :  { %1262 = vlog2.f32 %v455_v21 }
 0x155   :  { %1264 = vlog2.f32 %v556_v53 }
 0x156   :  { %v1257_v8 = vpop.eup %1256 }
 0x157   :  { %v157_v24 = vmul.f32 0.6931472, %v1257_v8  ;;  %v657_v25 = vpop.xlane.xlu1 %656  ;;  %v758_v28 = vpop.xlane.xlu0 %757 }
 0x158   :  { %1266 = vlog2.f32 %v657_v25 }
 0x159   :  { %1268 = vlog2.f32 %v758_v28  ;;  %v160_v19 = vadd.f32 %v157_v24, %v1673_v59 }
 0x15a   :  { %v1259_v30 = vpop.eup %1258 }
 0x15b   :  { %v1261_v31 = vpop.eup %1260  ;;  %v258_v20 = vmul.f32 0.6931472, %v1259_v30  ;;  %v162_v27 = vsub.f32 %v129_v23, %v160_v19  ;;  %v859_v38 = vpop.xlane.xlu1 %858 }
 0x15c   :  { %v155_v40 = vpop.xlane.xlu0 %154  ;;  %v359_v45 = vmul.f32 0.6931472, %v1261_v31  ;;  %1270 = vlog2.f32 %v859_v38 }
 0x15d   :  { %164 = vst [vmem:[#allocation2] sm:$0xff] %v162_v27  ;;  %v261_v5 = vadd.f32 %v258_v20, %v1683_v1  ;;  %1272 = vlog2.f32 %v155_v40 }
 0x15e   :  { %v1263_v34 = vpop.eup %1262  ;;  %v362_v50 = vadd.f32 %v359_v45, %v1675_v60 }
 0x15f   :  { %v1265_v55 = vpop.eup %1264  ;;  %v460_v9 = vmul.f32 0.6931472, %v1263_v34  ;;  %v263_v42 = vsub.f32 %v1786_v39, %v261_v5  ;;  %v256_v59 = vpop.xlane.xlu1 %255 }
 0x160   :  { %v357_v58 = vpop.xlane.xlu0 %356  ;;  %v561_v63 = vmul.f32 0.6931472, %v1265_v55  ;;  %v364_v23 = vsub.f32 %v1790_v3, %v362_v50  ;;  %1274 = vlog2.f32 %v256_v59 }
 0x161   :  { %265 = vst [vmem:[#allocation2 + $0x10] sm:$0xff] %v263_v42  ;;  %1276 = vlog2.f32 %v357_v58  ;;  %v463_v13 = vadd.f32 %v460_v9, %v1685_v10 }
 0x162   :  { %v1267_v47 = vpop.eup %1266  ;;  %366 = vst [vmem:[#allocation2 + $0x20] sm:$0xff] %v364_v23  ;;  %v564_v1 = vadd.f32 %v561_v63, %v1693_v18 }
 0x163   :  { %v1269_v15 = vpop.eup %1268  ;;  %v662_v60 = vmul.f32 0.6931472, %v1267_v47  ;;  %v465_v17 = vsub.f32 %v1794_v49, %v463_v13  ;;  %v458_v16 = vpop.xlane.xlu1 %457 }
 0x164   :  { %v559_v39 = vpop.xlane.xlu0 %558  ;;  %v763_v52 = vmul.f32 0.6931472, %v1269_v15  ;;  %v566_v22 = vsub.f32 %v1798_v4, %v564_v1  ;;  %1278 = vlog2.f32 %v458_v16 }
 0x165   :  { %467 = vst [vmem:[#allocation2 + $0x30] sm:$0xff] %v465_v17  ;;  %1280 = vlog2.f32 %v559_v39  ;;  %v665_v3 = vadd.f32 %v662_v60, %v1695_v7  ;;  %v1372_v17 = vmov %v1777_v35  }
 0x166   :  { %v1271_v21 = vpop.eup %1270  ;;  %568 = vst [vmem:[#allocation2 + $0x40] sm:$0xff] %v566_v22  ;;  %v766_v10 = vadd.f32 %v763_v52, %v1703_v11 }
 0x167   :  { %v1273_v53 = vpop.eup %1272  ;;  %v864_v18 = vmul.f32 0.6931472, %v1271_v21  ;;  %v667_v8 = vsub.f32 %v1802_v57, %v665_v3  ;;  %v660_v24 = vpop.xlane.xlu1 %659 }
 0x168   :  { %v761_v49 = vpop.xlane.xlu0 %760  ;;  %v159_v25 = vmul.f32 0.6931472, %v1273_v53  ;;  %v768_v28 = vsub.f32 %v1806_v12, %v766_v10  ;;  %1282 = vlog2.f32 %v660_v24 }
 0x169   :  { %669 = vst [vmem:[#allocation2 + $0x50] sm:$0xff] %v667_v8  ;;  %1284 = vlog2.f32 %v761_v49  ;;  %v867_v4 = vadd.f32 %v864_v18, %v1705_v26 }
 0x16a   :  { %v1275_v19 = vpop.eup %1274  ;;  %v161_v7 = vadd.f32 %v159_v25, %v1713_v33  ;;  %770 = vst [vmem:[#allocation2 + $0x60] sm:$0xff] %v768_v28  ;;  %v878_v33 = vld [vmem:[#allocation2] ss:$16 sm:$0x3] }
 0x16b   :  { %v1277_v30 = vpop.eup %1276  ;;  %v260_v11 = vmul.f32 0.6931472, %v1275_v19  ;;  %v869_v31 = vsub.f32 %v1810_v14, %v867_v4  ;;  %v862_v20 = vpop.xlane.xlu1 %861 }
 0x16c   :  { %v163_v57 = vsub.f32 %v1784_v37, %v161_v7  ;;  %v361_v27 = vmul.f32 0.6931472, %v1277_v30  ;;  %1286 = vlog2.f32 %v862_v20  ;;  %v879_v40 = vld [vmem:[#allocation2] ss:$16 sm:$0xc] }
 0x16d   :  { %v262_v12 = vadd.f32 %v260_v11, %v1716_v36  ;;  %871 = vst [vmem:[#allocation2 + $0x70] sm:$0xff] %v869_v31  ;;  %v880_v37 = vor.u32 %v879_v40, %v878_v33 }
 0x16e   :  { %v1279_v38 = vpop.eup %1278  ;;  %165 = vst [vmem:[#allocation2 + $0x8] sm:$0xff] %v163_v57  ;;  %v363_v26 = vadd.f32 %v361_v27, %v1725_v44 }
 0x16f   :  { %v1281_v45 = vpop.eup %1280  ;;  %v264_v5 = vsub.f32 %v1788_v43, %v262_v12  ;;  %v462_v34 = vmul.f32 0.6931472, %v1279_v38 }
 0x170   :  { %v365_v14 = vsub.f32 %v1792_v29, %v363_v26  ;;  %v563_v50 = vmul.f32 0.6931472, %v1281_v45  ;;  %v881_v55 = vld [vmem:[#allocation2] ss:$16 sm:$0x30] }
 0x171   :  { %266 = vst [vmem:[#allocation2 + $0x18] sm:$0xff] %v264_v5  ;;  %v464_v9 = vadd.f32 %v462_v34, %v1728_v48  ;;  %v882_v58 = vor.u32 %v881_v55, %v880_v37 }
 0x172   :  { %v1283_v36 = vpop.eup %1282  ;;  %367 = vst [vmem:[#allocation2 + $0x28] sm:$0xff] %v365_v14  ;;  %v565_v42 = vadd.f32 %v563_v50, %v1737_v54 }
 0x173   :  { %v1285_v59 = vpop.eup %1284  ;;  %v466_v44 = vsub.f32 %v1796_v51, %v464_v9  ;;  %v664_v63 = vmul.f32 0.6931472, %v1283_v36 }
 0x174   :  { %v567_v43 = vsub.f32 %v1800_v41, %v565_v42  ;;  %v765_v23 = vmul.f32 0.6931472, %v1285_v59  ;;  %v883_v13 = vld [vmem:[#allocation2] ss:$16 sm:$0xc0] }
 0x175   :  { %468 = vst [vmem:[#allocation2 + $0x38] sm:$0xff] %v466_v44  ;;  %v666_v29 = vadd.f32 %v664_v63, %v1740_v56  ;;  %v884_v47 = vor.u32 %v883_v13, %v882_v58  }
 0x176   :  { %v1287_v1 = vpop.eup %1286  ;;  %569 = vst [vmem:[#allocation2 + $0x48] sm:$0xff] %v567_v43  ;;  %v767_v48 = vadd.f32 %v765_v23, %v1749_v62  ;;  %v1364_v62 = vmov (!%p982_p13), %v1777_v35  }
 0x177   :  { %v668_v15 = vsub.f32 %v1804_v61, %v666_v29  ;;  %v866_v54 = vmul.f32 0.6931472, %v1287_v1  ;;  %971 = sbr.rel (%p982_p13) target bundleno = 538 (0x21a), region = 62  ;;  %v1360_v56 = vmov (!%p982_p13), %v884_v47  }
 0x178   :  { %v769_v60 = vsub.f32 %v1808_v46, %v767_v48 }
 0x179   :  { %670 = vst [vmem:[#allocation2 + $0x58] sm:$0xff] %v668_v15  ;;  %v868_v51 = vadd.f32 %v866_v54, %v1752_v0 }
 0x17a   :  { %771 = vst [vmem:[#allocation2 + $0x68] sm:$0xff] %v769_v60 }
 0x17b   :  { %v870_v41 = vsub.f32 %v1812_v6, %v868_v51 }
 0x17d   :  { %872 = vst [vmem:[#allocation2 + $0x78] sm:$0xff] %v870_v41 }
 0x17e LB: > { %v1383_v0 = vmov 0   ;;  %s1384_s16 = smov 1   ;;  %s1854_s17 = sadd.s32 1, %s1370_s15   ;;  %v925_v61 = vstv %s1370_s15  ;;  %vm909_vm9 = vcmp.eq.s32.totalorder %v1437_v2, 0  ;;  %s1370_s15 = sphi %s1851_s15, %s1892_s15   ;;  %v1366_v62 = vphi %v1364_v62, %v1365_v62   ;;  %v1362_v56 = vphi %v1360_v56, %v1361_v56  }
 0x17f   : > { %1288 = vset.pattern.permute.xlu0 %v1383_v0  ;;  %p895_p1 = scmp.lt.s32.totalorder %s1854_s17, 15  ;;  %vm926_vm0 = vcmp.lt.s32.totalorder %v925_v61, %v1775_v32  ;;  %p907_p2 = scmp.eq.s32.totalorder %s1370_s15, 0 }
 0x180   : > { %905 = vrot.lane.b32.xlu0 %v1366_v62, %s1384_s16  ;;  %v927_v35 = vsel %vm926_vm0, 1, %v1383_v0  ;;  %p887_p3 = scmp.ge.s32.totalorder %s1854_s17, %s1782_s14  ;;  %s1892_s15 = smov %s1854_s17 }
 0x181   : > { %s896_s0 = scalar_select %p895_p1, %s1854_s17, 15 }
 0x182   : > { %s908_s19 = scalar_select %p907_p2, 0.0, -1e+30 }
 0x183   : > { %s897_s18 = scalar_lea.vmem [#allocation2], %s896_s0 }
 0x184   : > { %929 = vperm.xlu0 %1288, %v927_v35   ;;  %v898_v46 = vld [vmem:[%s897_s18] ss:$16 sm:$0x3]  ;;  %v912_v21 = vstv %s908_s19 }
 0x185   : > { %v899_v6 = vld [vmem:[%s897_s18] ss:$16 sm:$0xc] }
 0x186   : > { %v900_v16 = vor.u32 %v899_v6, %v898_v46  ;;  %v901_v39 = vld [vmem:[%s897_s18] ss:$16 sm:$0x30] }
 0x187   : > { %v903_v52 = vld [vmem:[%s897_s18] ss:$16 sm:$0xc0] }
 0x188   : > { %v902_v22 = vor.u32 %v901_v39, %v900_v16 }
 0x18a   : > { %v904_v3 = vor.u32 %v903_v52, %v902_v22  }
 0x1f2   : > { %v906_v10 = vpop.permute.xlu0 %905 }
 0x1f3   : > { %v913_v53 = vsel %vm909_vm9, %v912_v21, %v906_v10 }
 0x1f4   : > { %v916_v18 = vsub.f32 %v1366_v62, %v913_v53  ;;  %v914_v4 = vmax.f32 %v1366_v62, %v913_v53 }
 0x1f6   : > { %v917_v8 = vand.u32 2147483647, %v916_v18  ;;  %v915_v30 = vadd.f32 %v1362_v56, %v914_v4  ;;  %v1361_v56 = vmov %v904_v3  }
 0x1f8   : > { %v918_v24 = vsub.f32 0.0, %v917_v8 }
 0x1fa   : > { %v919_v49 = vmul.f32 1.442695, %v918_v24 }
 0x1fc   : > { %1289 = vpow2.f32 %v919_v49 }
 0x203   : > { %v930_v19 = vpop.permute.xlu0 %929 }
 0x204   : > { %vm931_vm7 = vcmp.eq.s32.totalorder %v930_v19, 1 }
 0x206   : > { %v1290_v25 = vpop.eup %1289 }
 0x207   : > { %v921_v28 = vadd.f32 1.0, %v1290_v25 }
 0x209   : > { %1291 = vlog2.f32 %v921_v28 }
 0x213   : > { %v1292_v7 = vpop.eup %1291  ;;  %890 = sbr.rel (!%p887_p3) target bundleno = 382 (0x17e), region = 68 }
 0x214   : > { %v923_v11 = vmul.f32 0.6931472, %v1292_v7 }
 0x216   : > { %v924_v31 = vadd.f32 %v923_v11, %v915_v30 }
 0x218   : > { %v932_v20 = vsel %vm931_vm7, %v924_v31, %v1366_v62  }
 0x219   : > { %v1365_v62 = vmov %v932_v20   ;;  %v1373_v17 = vmov (%p887_p3), %v932_v20  }
 0x21a PF:  { %933 = vst [vmem:[#allocation3] sm:$0xff] %v1374_v17  ;;  %v1374_v17 = vphi %v1372_v17, %v1373_v17  }
 0x21b PF:  { %v938_v57 = vld [vmem:[%s1886_s5] sm:$0xff]  ;;  %v1385_v27 = vmov 0   ;;  %s1386_s22 = smov [#allocation10]  }
 0x21c   :  { %1293 = vset.pattern.permute.xlu0 %v1385_v27  ;;  %v1072_v12 = vadd.s32 4294967295, %v938_v57  ;;  %s955_s23 = sshll.u32 %s1386_s22, 4  ;;  %s956_s23 = int_to_ptr.vmem [resolvable:$true] %s955_s23 }
 0x21d   :  { %s1318_s24 = scalar_lea.vmem %s956_s23, 128  ;;  %p1323_p5 = scmp.lt.s32.totalorder %s956_s23, %s956_s23 }
 0x21e   :  { %941 = vperm.xlu0 %1293, %v1072_v12   ;;  %p1319_p4 = scmp.ne.s32.totalorder %s956_s23, %s1318_s24  ;;  %p1324_p6 = scmp.lt.s32.totalorder %s1318_s24, %s1318_s24 }
 0x220   :  { %p1325_p7 = por %p1324_p6, %p1323_p5 }
 0x221   :  { %v937_v38 = vld [vmem:[#allocation3] sm:$0xff] }
 0x222   :  { %p1326_p8 = pnand %p1325_p7, %p1319_p4 }
 0x29d   :  { %v942_v40 = vpop.permute.xlu0 %941 }
 0x29e   :  { %vm943_vm8 = vcmp.eq.s32.totalorder %v1437_v2, %v942_v40 }
 0x29f   :  { %v944_v26 = vsel %vm943_vm8, %v937_v38, -1e+30 }
 0x2a0   :  { %945 = vmax.xlane.f32.xlu0 %v944_v26 }
 0x32d   :  { %v946_v32 = vpop.xlane.xlu0 %945 }
 0x32e   :  { %v947_v45 = vsub.f32 0.0, %v946_v32 }
 0x330   :  { %948 = vst [vmem:[#allocation10] sm:$0xff] %v947_v45 }
 0x331   :  { %1329 = shalt.err (!%p1326_p8)
}
 0x332   :  { %s1330_s26 = scalar_lea.hbm %s1887_s6, 128 }
 0x333   :  { %p1331_p9 = scmp.ne.s32.totalorder %s1887_s6, %s1330_s26  ;;  %p1334_p10 = scmp.lt.u32.totalorder %s1330_s26, %s1887_s6 }
 0x335   :  { %p1336_p11 = pnand %p1334_p10, %p1331_p9 }
 0x337   :  { %1339 = shalt.err (!%p1336_p11)
}
 0x338   :  { %958 = dma.vmem_to_hbm [thread:$0]  %s956_s23, 128, %s1887_s6, [#allocation9]  }
 0x339   :  { %1358 = dma.done.wait [#allocation9], 128  }
 0x33a   :  { %1359 = vsyncadd [#allocation9], 4294967168 }
 0x33b   :  { %962 = vsyncpa [#allocation8], 1 }
 0x33c   :  { %963 = vsyncpa [#allocation9], 1 }

</bundles_post_ra>
